<compile_context>
chip_gen: v6e
topology: v6e:2x2x1
jax: 0.10.0
libtpu: 0.0.40
codegen_flags: <defaults>
</compile_context>

<pallas_src>
import functools

import jax
import jax.numpy as jnp
from jax.experimental import pallas as pl
from jax.experimental.pallas import tpu as pltpu

LANE = 128


def _round_up(x, m):
    return (x + m - 1) // m * m


def _leaky_relu(x, slope=0.2):
    return jnp.where(x > 0, x, slope * x)


def _batchnorm1d_train(x, eps):
    # training-mode BatchNorm1d, gamma=1, beta=0, biased variance
    mean = jnp.mean(x, axis=0, keepdims=True)
    var = jnp.mean((x - mean) ** 2, axis=0, keepdims=True)
    return (x - mean) * jax.lax.rsqrt(var + eps)


def generator2_kernel(
    ph_ref, pr_ref, z_ref, tgt_ref,   # activations (B,Ep) f32 + film target (1,4Ep) f32
    wf_ref, bf_ref,                   # filt2 FiLM head: (Ep,4Ep) bf16, (1,4Ep) f32
    w1_ref, b1_ref,                   # genMLP1 linear:  (Ep,Ep) bf16, (1,Ep) f32
    w2_ref, b2_ref,                   # genMLP2 linear:  (Ep,Ep) bf16, (1,Ep) f32
    wo_ref, bo_ref,                   # output  linear:  (Ep,Ep) bf16, (1,Ep) f32
    out_ref, reg_ref,                 # (B,Ep) f32 VMEM, (1,1) f32 SMEM
    *, e_pad,
):
    ph = ph_ref[...]
    pr = pr_ref[...]
    x = ph * pr                                            # torch.mul(pos_head, pos_rel)

    # FiLM parameters from args.filt2(x); bf16 operands, f32 accumulation.
    film = jnp.dot(x.astype(jnp.bfloat16), wf_ref[...],
                   preferred_element_type=jnp.float32) + bf_ref[...]

    # Fused L2 regularizer: one squared-residual pass + vreg-aligned segment sums.
    # target is 1 on valid alpha lanes, 0 elsewhere (padded lanes of film are 0,
    # so they contribute exactly 0).
    diff = film - tgt_ref[...]
    col_sq = jnp.sum(diff * diff, axis=0, keepdims=True)   # (1, 4*Ep)
    reg = jnp.float32(0.0)
    for s in range(4):
        seg = col_sq[:, s * e_pad:(s + 1) * e_pad]         # 128-lane aligned slice
        reg = reg + jnp.sqrt(jnp.sum(seg))
    reg = reg / 4.0

    # 128-lane aligned FiLM splits.
    alpha1 = film[:, 0 * e_pad:1 * e_pad]
    beta1 = film[:, 1 * e_pad:2 * e_pad]
    alpha2 = film[:, 2 * e_pad:3 * e_pad]
    beta2 = film[:, 3 * e_pad:4 * e_pad]

    # y = x + z ; MLP1
    y = x + z_ref[...]
    h1 = jnp.dot(y.astype(jnp.bfloat16), w1_ref[...],
                 preferred_element_type=jnp.float32) + b1_ref[...]
    h1 = _leaky_relu(h1)                                   # genMLP1 LeakyReLU(0.2)
    h1 = h1 * alpha1 + beta1                               # FiLM
    h1 = _batchnorm1d_train(h1, eps=0.8)                   # bn1_g2 (eps=0.8)
    h1 = _leaky_relu(h1)                                   # self.activation

    # MLP2
    h2 = jnp.dot(h1.astype(jnp.bfloat16), w2_ref[...],
                 preferred_element_type=jnp.float32) + b2_ref[...]
    h2 = _leaky_relu(h2)                                   # genMLP2 LeakyReLU(0.2)
    h2 = h2 * alpha2 + beta2                               # FiLM
    h2 = _batchnorm1d_train(h2, eps=0.8)                   # bn2_g2 (eps=0.8)
    h2 = _leaky_relu(h2)                                   # self.activation

    # output head: Linear + Tanh
    out = jnp.tanh(jnp.dot(h2.astype(jnp.bfloat16), wo_ref[...],
                           preferred_element_type=jnp.float32) + bo_ref[...])

    out_ref[...] = out.astype(out_ref.dtype)               # lane-dense (B, Ep) store
    reg_ref[0, 0] = reg.astype(jnp.float32)                # scalar -> SMEM


def prepare_params(params, E):
    """Pad logical-E params to a lane-dense (E_pad = multiple of 128) layout.

    Done once, offline.  Weights go to bf16 (MXU operands); biases stay f32.
    The FiLM head (E, 4E) is rearranged so segment k occupies columns
    [k*E_pad, k*E_pad + E) of a (E_pad, 4*E_pad) matrix.
    """
    e_pad = max(LANE, _round_up(E, LANE))
    pe = e_pad - E

    def pad_w(w):   # (E, E) -> (Ep, Ep), bf16
        return jnp.pad(w, ((0, pe), (0, pe))).astype(jnp.bfloat16)

    def pad_b(b):   # (1, E) -> (1, Ep), f32
        return jnp.pad(b, ((0, 0), (0, pe))).astype(jnp.float32)

    wf = jnp.zeros((e_pad, 4 * e_pad), jnp.float32)
    bf = jnp.zeros((1, 4 * e_pad), jnp.float32)
    tgt = jnp.zeros((1, 4 * e_pad), jnp.float32)
    for s in range(4):
        wf = wf.at[:E, s * e_pad:s * e_pad + E].set(params["wf"][:, s * E:(s + 1) * E])
        bf = bf.at[:, s * e_pad:s * e_pad + E].set(params["bf"][:, s * E:(s + 1) * E])
    # alpha segments (0 and 2): regularizer target is 1 on valid lanes.
    tgt = tgt.at[:, 0 * e_pad:0 * e_pad + E].set(1.0)
    tgt = tgt.at[:, 2 * e_pad:2 * e_pad + E].set(1.0)

    return {
        "wf": wf.astype(jnp.bfloat16), "bf": bf, "tgt": tgt,
        "w1": pad_w(params["w1"]), "b1": pad_b(params["b1"]),
        "w2": pad_w(params["w2"]), "b2": pad_b(params["b2"]),
        "wo": pad_w(params["wo"]), "bo": pad_b(params["bo"]),
    }, e_pad


@functools.partial(jax.jit, static_argnames=("e_pad", "E"))
def _forward_jit(pos_head, pos_rel, z, padded_params, e_pad, E):
    B = pos_head.shape[0]
    pe = e_pad - E

    def pad_act(a):
        return jnp.pad(a.astype(jnp.float32), ((0, 0), (0, pe)))

    ph = pad_act(pos_head)
    pr = pad_act(pos_rel)
    zp = pad_act(z)

    vmem = pl.BlockSpec(memory_space=pltpu.MemorySpace.VMEM)
    smem = pl.BlockSpec(memory_space=pltpu.MemorySpace.SMEM)

    out_shape = (
        jax.ShapeDtypeStruct((B, e_pad), jnp.float32),   # oupt (lane-dense, padded)
        jax.ShapeDtypeStruct((1, 1), jnp.float32),       # filt2_l2_regularization
    )
    fn = pl.pallas_call(
        functools.partial(generator2_kernel, e_pad=e_pad),
        out_shape=out_shape,
        in_specs=[vmem] * 12,
        out_specs=(vmem, smem),
    )
    out_pad, reg = fn(
        ph, pr, zp, padded_params["tgt"],
        padded_params["wf"], padded_params["bf"],
        padded_params["w1"], padded_params["b1"],
        padded_params["w2"], padded_params["b2"],
        padded_params["wo"], padded_params["bo"],
    )
    return out_pad[:, :E], reg


def generator2_forward(pos_head, pos_rel, z, padded_params, e_pad):
    B, E = pos_head.shape
    return _forward_jit(pos_head, pos_rel, z, padded_params, e_pad, E)


def init_params(key, E):
    ks = jax.random.split(key, 8)
    scale = 1.0 / jnp.sqrt(E)
    # Weights stored as (in_features, out_features), i.e. torch W^T.
    return {
        "wf": jax.random.uniform(ks[0], (E, 4 * E), jnp.float32, -scale, scale),
        "bf": jax.random.uniform(ks[1], (1, 4 * E), jnp.float32, -scale, scale),
        "w1": jax.random.uniform(ks[2], (E, E), jnp.float32, -scale, scale),
        "b1": jax.random.uniform(ks[3], (1, E), jnp.float32, -scale, scale),
        "w2": jax.random.uniform(ks[4], (E, E), jnp.float32, -scale, scale),
        "b2": jax.random.uniform(ks[5], (1, E), jnp.float32, -scale, scale),
        "wo": jax.random.uniform(ks[6], (E, E), jnp.float32, -scale, scale),
        "bo": jax.random.uniform(ks[7], (1, E), jnp.float32, -scale, scale),
    }


if __name__ == "__main__":
    B, E = 8, 32  # batch, node_embed_size (logical); padded to 128 lanes internally

    root = jax.random.PRNGKey(0)
    k_ph, k_pr, k_z, k_params = jax.random.split(root, 4)

    pos_head = jax.random.normal(k_ph, (B, E), jnp.float32)
    pos_rel = jax.random.normal(k_pr, (B, E), jnp.float32)
    # z ~ Normal(0, 0.01)  (replaces torch.normal; deterministic key)
    z = 0.01 * jax.random.normal(k_z, (B, E), jnp.float32)

    params = init_params(k_params, E)
    padded_params, e_pad = prepare_params(params, E)

    oupt, reg = generator2_forward(pos_head, pos_rel, z, padded_params, e_pad)
    jax.block_until_ready((oupt, reg))

    assert oupt.shape == (B, E) and reg.shape == (1, 1)
    assert bool(jnp.all(jnp.isfinite(oupt))) and bool(jnp.isfinite(reg[0, 0]))
    print("KERNEL_OK")
</pallas_src>

<mosaic_0001>
module attributes {stable_mosaic.version = 11 : i64} {
  func.func @generator2_kernel(%arg0: memref<8x128xf32, #tpu.memory_space<vmem>>, %arg1: memref<8x128xf32, #tpu.memory_space<vmem>>, %arg2: memref<8x128xf32, #tpu.memory_space<vmem>>, %arg3: memref<1x512xf32, #tpu.memory_space<vmem>>, %arg4: memref<128x512xbf16, #tpu.memory_space<vmem>>, %arg5: memref<1x512xf32, #tpu.memory_space<vmem>>, %arg6: memref<128x128xbf16, #tpu.memory_space<vmem>>, %arg7: memref<1x128xf32, #tpu.memory_space<vmem>>, %arg8: memref<128x128xbf16, #tpu.memory_space<vmem>>, %arg9: memref<1x128xf32, #tpu.memory_space<vmem>>, %arg10: memref<128x128xbf16, #tpu.memory_space<vmem>>, %arg11: memref<1x128xf32, #tpu.memory_space<vmem>>, %arg12: memref<8x128xf32, #tpu.memory_space<vmem>>, %arg13: memref<1x1xf32, #tpu.memory_space<smem>>) attributes {dimension_semantics = [], scalar_prefetch = 0 : i64, scratch_operands = 0 : i64, tpu.core_type = #tpu.core_type<tc>} {
    %c0 = arith.constant 0 : index
    %c0_0 = arith.constant 0 : index
    %0 = vector.load %arg0[%c0, %c0_0] : memref<8x128xf32, #tpu.memory_space<vmem>>, vector<8x128xf32>
    %c0_1 = arith.constant 0 : index
    %c0_2 = arith.constant 0 : index
    %1 = vector.load %arg1[%c0_1, %c0_2] : memref<8x128xf32, #tpu.memory_space<vmem>>, vector<8x128xf32>
    %2 = arith.mulf %0, %1 : vector<8x128xf32>
    %3 = arith.truncf %2 : vector<8x128xf32> to vector<8x128xbf16>
    %c0_3 = arith.constant 0 : index
    %c0_4 = arith.constant 0 : index
    %4 = vector.load %arg4[%c0_3, %c0_4] : memref<128x512xbf16, #tpu.memory_space<vmem>>, vector<128x512xbf16>
    %cst = arith.constant dense<0.000000e+00> : vector<8x512xf32>
    %5 = tpu.matmul %3, %4, %cst {dimension_numbers = #tpu.dot_dimension_numbers<[1], [0], [0], [1], [0, 0, 1, 1], [], []>} : vector<8x128xbf16>, vector<128x512xbf16>, vector<8x512xf32> -> vector<8x512xf32>
    %c0_5 = arith.constant 0 : index
    %c0_6 = arith.constant 0 : index
    %6 = vector.load %arg5[%c0_5, %c0_6] : memref<1x512xf32, #tpu.memory_space<vmem>>, vector<1x512xf32>
    %7 = vector.broadcast %6 : vector<1x512xf32> to vector<8x512xf32>
    %8 = arith.addf %5, %7 : vector<8x512xf32>
    %c0_7 = arith.constant 0 : index
    %c0_8 = arith.constant 0 : index
    %9 = vector.load %arg3[%c0_7, %c0_8] : memref<1x512xf32, #tpu.memory_space<vmem>>, vector<1x512xf32>
    %10 = vector.broadcast %9 : vector<1x512xf32> to vector<8x512xf32>
    %11 = arith.subf %8, %10 : vector<8x512xf32>
    %12 = arith.mulf %11, %11 : vector<8x512xf32>
    %cst_9 = arith.constant dense<0.000000e+00> : vector<512xf32>
    %13 = vector.multi_reduction <add>, %12, %cst_9 [0] : vector<8x512xf32> to vector<512xf32>
    %14 = vector.shape_cast %13 : vector<512xf32> to vector<1x512xf32>
    %15 = vector.extract_strided_slice %14 {offsets = [0, 0], sizes = [1, 128], strides = [1, 1]} : vector<1x512xf32> to vector<1x128xf32>
    %16 = vector.shape_cast %15 : vector<1x128xf32> to vector<1x1x128xf32>
    %cst_10 = arith.constant dense<0.000000e+00> : vector<1xf32>
    %17 = vector.multi_reduction <add>, %16, %cst_10 [1, 2] : vector<1x1x128xf32> to vector<1xf32>
    %18 = vector.shape_cast %17 : vector<1xf32> to vector<1x1x1xf32>
    %19 = vector.extract %18[0, 0, 0] : f32 from vector<1x1x1xf32>
    %20 = math.sqrt %19 : f32
    %cst_11 = arith.constant 0.000000e+00 : f32
    %21 = arith.addf %cst_11, %20 : f32
    %22 = vector.extract_strided_slice %14 {offsets = [0, 128], sizes = [1, 128], strides = [1, 1]} : vector<1x512xf32> to vector<1x128xf32>
    %23 = vector.shape_cast %22 : vector<1x128xf32> to vector<1x1x128xf32>
    %cst_12 = arith.constant dense<0.000000e+00> : vector<1xf32>
    %24 = vector.multi_reduction <add>, %23, %cst_12 [1, 2] : vector<1x1x128xf32> to vector<1xf32>
    %25 = vector.shape_cast %24 : vector<1xf32> to vector<1x1x1xf32>
    %26 = vector.extract %25[0, 0, 0] : f32 from vector<1x1x1xf32>
    %27 = math.sqrt %26 : f32
    %28 = arith.addf %21, %27 : f32
    %29 = vector.extract_strided_slice %14 {offsets = [0, 256], sizes = [1, 128], strides = [1, 1]} : vector<1x512xf32> to vector<1x128xf32>
    %30 = vector.shape_cast %29 : vector<1x128xf32> to vector<1x1x128xf32>
    %cst_13 = arith.constant dense<0.000000e+00> : vector<1xf32>
    %31 = vector.multi_reduction <add>, %30, %cst_13 [1, 2] : vector<1x1x128xf32> to vector<1xf32>
    %32 = vector.shape_cast %31 : vector<1xf32> to vector<1x1x1xf32>
    %33 = vector.extract %32[0, 0, 0] : f32 from vector<1x1x1xf32>
    %34 = math.sqrt %33 : f32
    %35 = arith.addf %28, %34 : f32
    %36 = vector.extract_strided_slice %14 {offsets = [0, 384], sizes = [1, 128], strides = [1, 1]} : vector<1x512xf32> to vector<1x128xf32>
    %37 = vector.shape_cast %36 : vector<1x128xf32> to vector<1x1x128xf32>
    %cst_14 = arith.constant dense<0.000000e+00> : vector<1xf32>
    %38 = vector.multi_reduction <add>, %37, %cst_14 [1, 2] : vector<1x1x128xf32> to vector<1xf32>
    %39 = vector.shape_cast %38 : vector<1xf32> to vector<1x1x1xf32>
    %40 = vector.extract %39[0, 0, 0] : f32 from vector<1x1x1xf32>
    %41 = math.sqrt %40 : f32
    %42 = arith.addf %35, %41 : f32
    %cst_15 = arith.constant 4.000000e+00 : f32
    %43 = arith.divf %42, %cst_15 : f32
    %44 = vector.extract_strided_slice %8 {offsets = [0, 0], sizes = [8, 128], strides = [1, 1]} : vector<8x512xf32> to vector<8x128xf32>
    %45 = vector.extract_strided_slice %8 {offsets = [0, 128], sizes = [8, 128], strides = [1, 1]} : vector<8x512xf32> to vector<8x128xf32>
    %46 = vector.extract_strided_slice %8 {offsets = [0, 256], sizes = [8, 128], strides = [1, 1]} : vector<8x512xf32> to vector<8x128xf32>
    %47 = vector.extract_strided_slice %8 {offsets = [0, 384], sizes = [8, 128], strides = [1, 1]} : vector<8x512xf32> to vector<8x128xf32>
    %c0_16 = arith.constant 0 : index
    %c0_17 = arith.constant 0 : index
    %48 = vector.load %arg2[%c0_16, %c0_17] : memref<8x128xf32, #tpu.memory_space<vmem>>, vector<8x128xf32>
    %49 = arith.addf %2, %48 : vector<8x128xf32>
    %50 = arith.truncf %49 : vector<8x128xf32> to vector<8x128xbf16>
    %c0_18 = arith.constant 0 : index
    %c0_19 = arith.constant 0 : index
    %51 = vector.load %arg6[%c0_18, %c0_19] : memref<128x128xbf16, #tpu.memory_space<vmem>>, vector<128x128xbf16>
    %cst_20 = arith.constant dense<0.000000e+00> : vector<8x128xf32>
    %52 = tpu.matmul %50, %51, %cst_20 {dimension_numbers = #tpu.dot_dimension_numbers<[1], [0], [0], [1], [0, 0, 1, 1], [], []>} : vector<8x128xbf16>, vector<128x128xbf16>, vector<8x128xf32> -> vector<8x128xf32>
    %c0_21 = arith.constant 0 : index
    %c0_22 = arith.constant 0 : index
    %53 = vector.load %arg7[%c0_21, %c0_22] : memref<1x128xf32, #tpu.memory_space<vmem>>, vector<1x128xf32>
    %54 = vector.broadcast %53 : vector<1x128xf32> to vector<8x128xf32>
    %55 = arith.addf %52, %54 : vector<8x128xf32>
    %cst_23 = arith.constant 0.000000e+00 : f32
    %56 = vector.broadcast %cst_23 : f32 to vector<8x128xf32>
    %57 = arith.cmpf ogt, %55, %56 : vector<8x128xf32>
    %cst_24 = arith.constant 2.000000e-01 : f32
    %58 = vector.broadcast %cst_24 : f32 to vector<8x128xf32>
    %59 = arith.mulf %58, %55 : vector<8x128xf32>
    %60 = arith.select %57, %55, %59 : vector<8x128xi1>, vector<8x128xf32>
    %61 = arith.mulf %60, %44 : vector<8x128xf32>
    %62 = arith.addf %61, %45 : vector<8x128xf32>
    %cst_25 = arith.constant dense<0.000000e+00> : vector<128xf32>
    %63 = vector.multi_reduction <add>, %62, %cst_25 [0] : vector<8x128xf32> to vector<128xf32>
    %64 = vector.shape_cast %63 : vector<128xf32> to vector<1x128xf32>
    %cst_26 = arith.constant 8.000000e+00 : f32
    %65 = vector.broadcast %cst_26 : f32 to vector<1x128xf32>
    %66 = arith.divf %64, %65 : vector<1x128xf32>
    %67 = vector.broadcast %66 : vector<1x128xf32> to vector<8x128xf32>
    %68 = arith.subf %62, %67 : vector<8x128xf32>
    %69 = arith.mulf %68, %68 : vector<8x128xf32>
    %cst_27 = arith.constant dense<0.000000e+00> : vector<128xf32>
    %70 = vector.multi_reduction <add>, %69, %cst_27 [0] : vector<8x128xf32> to vector<128xf32>
    %71 = vector.shape_cast %70 : vector<128xf32> to vector<1x128xf32>
    %cst_28 = arith.constant 8.000000e+00 : f32
    %72 = vector.broadcast %cst_28 : f32 to vector<1x128xf32>
    %73 = arith.divf %71, %72 : vector<1x128xf32>
    %74 = vector.broadcast %66 : vector<1x128xf32> to vector<8x128xf32>
    %75 = arith.subf %62, %74 : vector<8x128xf32>
    %cst_29 = arith.constant 8.000000e-01 : f32
    %76 = vector.broadcast %cst_29 : f32 to vector<1x128xf32>
    %77 = arith.addf %73, %76 : vector<1x128xf32>
    %78 = math.rsqrt %77 : vector<1x128xf32>
    %79 = vector.broadcast %78 : vector<1x128xf32> to vector<8x128xf32>
    %80 = arith.mulf %75, %79 : vector<8x128xf32>
    %cst_30 = arith.constant 0.000000e+00 : f32
    %81 = vector.broadcast %cst_30 : f32 to vector<8x128xf32>
    %82 = arith.cmpf ogt, %80, %81 : vector<8x128xf32>
    %cst_31 = arith.constant 2.000000e-01 : f32
    %83 = vector.broadcast %cst_31 : f32 to vector<8x128xf32>
    %84 = arith.mulf %83, %80 : vector<8x128xf32>
    %85 = arith.select %82, %80, %84 : vector<8x128xi1>, vector<8x128xf32>
    %86 = arith.truncf %85 : vector<8x128xf32> to vector<8x128xbf16>
    %c0_32 = arith.constant 0 : index
    %c0_33 = arith.constant 0 : index
    %87 = vector.load %arg8[%c0_32, %c0_33] : memref<128x128xbf16, #tpu.memory_space<vmem>>, vector<128x128xbf16>
    %cst_34 = arith.constant dense<0.000000e+00> : vector<8x128xf32>
    %88 = tpu.matmul %86, %87, %cst_34 {dimension_numbers = #tpu.dot_dimension_numbers<[1], [0], [0], [1], [0, 0, 1, 1], [], []>} : vector<8x128xbf16>, vector<128x128xbf16>, vector<8x128xf32> -> vector<8x128xf32>
    %c0_35 = arith.constant 0 : index
    %c0_36 = arith.constant 0 : index
    %89 = vector.load %arg9[%c0_35, %c0_36] : memref<1x128xf32, #tpu.memory_space<vmem>>, vector<1x128xf32>
    %90 = vector.broadcast %89 : vector<1x128xf32> to vector<8x128xf32>
    %91 = arith.addf %88, %90 : vector<8x128xf32>
    %cst_37 = arith.constant 0.000000e+00 : f32
    %92 = vector.broadcast %cst_37 : f32 to vector<8x128xf32>
    %93 = arith.cmpf ogt, %91, %92 : vector<8x128xf32>
    %cst_38 = arith.constant 2.000000e-01 : f32
    %94 = vector.broadcast %cst_38 : f32 to vector<8x128xf32>
    %95 = arith.mulf %94, %91 : vector<8x128xf32>
    %96 = arith.select %93, %91, %95 : vector<8x128xi1>, vector<8x128xf32>
    %97 = arith.mulf %96, %46 : vector<8x128xf32>
    %98 = arith.addf %97, %47 : vector<8x128xf32>
    %cst_39 = arith.constant dense<0.000000e+00> : vector<128xf32>
    %99 = vector.multi_reduction <add>, %98, %cst_39 [0] : vector<8x128xf32> to vector<128xf32>
    %100 = vector.shape_cast %99 : vector<128xf32> to vector<1x128xf32>
    %cst_40 = arith.constant 8.000000e+00 : f32
    %101 = vector.broadcast %cst_40 : f32 to vector<1x128xf32>
    %102 = arith.divf %100, %101 : vector<1x128xf32>
    %103 = vector.broadcast %102 : vector<1x128xf32> to vector<8x128xf32>
    %104 = arith.subf %98, %103 : vector<8x128xf32>
    %105 = arith.mulf %104, %104 : vector<8x128xf32>
    %cst_41 = arith.constant dense<0.000000e+00> : vector<128xf32>
    %106 = vector.multi_reduction <add>, %105, %cst_41 [0] : vector<8x128xf32> to vector<128xf32>
    %107 = vector.shape_cast %106 : vector<128xf32> to vector<1x128xf32>
    %cst_42 = arith.constant 8.000000e+00 : f32
    %108 = vector.broadcast %cst_42 : f32 to vector<1x128xf32>
    %109 = arith.divf %107, %108 : vector<1x128xf32>
    %110 = vector.broadcast %102 : vector<1x128xf32> to vector<8x128xf32>
    %111 = arith.subf %98, %110 : vector<8x128xf32>
    %cst_43 = arith.constant 8.000000e-01 : f32
    %112 = vector.broadcast %cst_43 : f32 to vector<1x128xf32>
    %113 = arith.addf %109, %112 : vector<1x128xf32>
    %114 = math.rsqrt %113 : vector<1x128xf32>
    %115 = vector.broadcast %114 : vector<1x128xf32> to vector<8x128xf32>
    %116 = arith.mulf %111, %115 : vector<8x128xf32>
    %cst_44 = arith.constant 0.000000e+00 : f32
    %117 = vector.broadcast %cst_44 : f32 to vector<8x128xf32>
    %118 = arith.cmpf ogt, %116, %117 : vector<8x128xf32>
    %cst_45 = arith.constant 2.000000e-01 : f32
    %119 = vector.broadcast %cst_45 : f32 to vector<8x128xf32>
    %120 = arith.mulf %119, %116 : vector<8x128xf32>
    %121 = arith.select %118, %116, %120 : vector<8x128xi1>, vector<8x128xf32>
    %122 = arith.truncf %121 : vector<8x128xf32> to vector<8x128xbf16>
    %c0_46 = arith.constant 0 : index
    %c0_47 = arith.constant 0 : index
    %123 = vector.load %arg10[%c0_46, %c0_47] : memref<128x128xbf16, #tpu.memory_space<vmem>>, vector<128x128xbf16>
    %cst_48 = arith.constant dense<0.000000e+00> : vector<8x128xf32>
    %124 = tpu.matmul %122, %123, %cst_48 {dimension_numbers = #tpu.dot_dimension_numbers<[1], [0], [0], [1], [0, 0, 1, 1], [], []>} : vector<8x128xbf16>, vector<128x128xbf16>, vector<8x128xf32> -> vector<8x128xf32>
    %c0_49 = arith.constant 0 : index
    %c0_50 = arith.constant 0 : index
    %125 = vector.load %arg11[%c0_49, %c0_50] : memref<1x128xf32, #tpu.memory_space<vmem>>, vector<1x128xf32>
    %126 = vector.broadcast %125 : vector<1x128xf32> to vector<8x128xf32>
    %127 = arith.addf %124, %126 : vector<8x128xf32>
    %128 = math.tanh %127 : vector<8x128xf32>
    %c0_51 = arith.constant 0 : index
    %c0_52 = arith.constant 0 : index
    %129 = vector.load %arg12[%c0_51, %c0_52] : memref<8x128xf32, #tpu.memory_space<vmem>>, vector<8x128xf32>
    tpu.vector_store %arg12[%c0_51, %c0_52], %128 {strides = array<i32>} : memref<8x128xf32, #tpu.memory_space<vmem>>, vector<8x128xf32>,
    %c0_53 = arith.constant 0 : index
    %c0_54 = arith.constant 0 : index
    %130 = memref.load %arg13[%c0_53, %c0_54] : memref<1x1xf32, #tpu.memory_space<smem>>
    memref.store %43, %arg13[%c0_53, %c0_54] : memref<1x1xf32, #tpu.memory_space<smem>>
    return
  }
}

</mosaic_0001>

<bundles_post_ra>
// kernel: _forward_jit.1
= control target key start
LH: loop header
LB: loop body
LE: loop exit
PB: predicated region body
PF: predicated region fallthrough
CT: control target
= control target key end

     0   :  { %19 = vsyncpa [#allocation3], 0  ;;  %s1655_s0 = inlined_call_operand.vmem [shape: f32[8,128], index: 0, kind: input, shape index: {}]   ;;  %s1656_s1 = inlined_call_operand.vmem [shape: f32[8,128], index: 1, kind: input, shape index: {}]   ;;  %s1657_s2 = inlined_call_operand.vmem [shape: f32[8,128], index: 2, kind: input, shape index: {}]   ;;  %s1658_s3 = inlined_call_operand.hbm [shape: f32[1,512], index: 3, kind: input, shape index: {}]   ;;  %s1659_s4 = inlined_call_operand.hbm [shape: bf16[128,512], index: 4, kind: input, shape index: {}]   ;;  %s1660_s5 = inlined_call_operand.hbm [shape: f32[1,512], index: 5, kind: input, shape index: {}]   ;;  %s1661_s6 = inlined_call_operand.vmem [shape: bf16[128,128], index: 6, kind: input, shape index: {}]   ;;  %s1662_s7 = inlined_call_operand.vmem [shape: f32[1,128], index: 7, kind: input, shape index: {}]   ;;  %s1663_s8 = inlined_call_operand.hbm [shape: bf16[128,128], index: 8, kind: input, shape index: {}]   ;;  %s1664_s9 = inlined_call_operand.hbm [shape: f32[1,128], index: 9, kind: input, shape index: {}]   ;;  %s1665_s10 = inlined_call_operand.hbm [shape: bf16[128,128], index: 10, kind: input, shape index: {}]   ;;  %s1666_s11 = inlined_call_operand.hbm [shape: f32[1,128], index: 11, kind: input, shape index: {}]   ;;  %s1667_s12 = inlined_call_operand.hbm [shape: f32[8,128], index: 12, kind: output, shape index: {0}]   ;;  %s1668_s13 = inlined_call_operand.hbm [shape: f32[1,1], index: 13, kind: output, shape index: {1}]  }
   0x1   :  { %20 = vsyncpa [#allocation7], 0 }
   0x2   :  { %21 = vsyncpa [#allocation10], 0 }
   0x3   :  { %22 = vsyncpa [#allocation13], 0 }
   0x4   :  { %23 = vsyncpa [#allocation4], 0 }
   0x5   :  { %24 = vsyncpa [#allocation5], 0  ;;  %s1443_s25 = smov [#allocation6]  }
   0x6   :  { %s46_s26 = sshll.u32 %s1443_s25, 4  ;;  %s47_s26 = int_to_ptr.vmem [resolvable:$true] %s46_s26 }
   0x7   :  { %s1271_s27 = scalar_lea.vmem %s47_s26, 4096  ;;  %p1276_p1 = scmp.lt.s32.totalorder %s47_s26, %s47_s26 }
   0x8   :  { %p1272_p0 = scmp.ne.s32.totalorder %s47_s26, %s1271_s27  ;;  %p1277_p2 = scmp.lt.s32.totalorder %s1271_s27, %s1271_s27 }
   0xa   :  { %p1278_p3 = por %p1277_p2, %p1276_p1 }
   0xc   :  { %p1279_p4 = pnand %p1278_p3, %p1272_p0 }
   0xe   :  { %1282 = shalt.err (!%p1279_p4)
}
   0xf   :  { %s1444_s28 = smov 256   ;;  %s1445_s29 = smov 16  }
  0x10   :  { %52 = dma.hbm_to_vmem [thread:$0]  %s1659_s4, 4096, %s47_s26, [#allocation7], %s1444_s28, %s1444_s28, %s1445_s29  }
  0x11   :  { %s1446_s15 = smov [#allocation9]  }
  0x12   :  { %s72_s16 = sshll.u32 %s1446_s15, 4  ;;  %s73_s16 = int_to_ptr.vmem [resolvable:$true] %s72_s16 }
  0x13   :  { %s1291_s17 = scalar_lea.vmem %s73_s16, 1024  ;;  %p1296_p6 = scmp.lt.s32.totalorder %s73_s16, %s73_s16 }
  0x14   :  { %p1292_p5 = scmp.ne.s32.totalorder %s73_s16, %s1291_s17  ;;  %p1297_p7 = scmp.lt.s32.totalorder %s1291_s17, %s1291_s17 }
  0x16   :  { %p1298_p8 = por %p1297_p7, %p1296_p6 }
  0x18   :  { %p1299_p9 = pnand %p1298_p8, %p1292_p5 }
  0x1a   :  { %1302 = shalt.err (!%p1299_p9)
}
  0x1b   :  { %s1447_s18 = smov 64   ;;  %s1448_s19 = smov 4  }
  0x1c   :  { %78 = dma.hbm_to_vmem [thread:$0]  %s1663_s8, 1024, %s73_s16, [#allocation10], %s1447_s18, %s1447_s18, %s1448_s19  }
  0x1d   :  { %s1449_s22 = smov [#allocation12]   ;;  %s1450_s24 = smov [#allocation2]  }
  0x1e   :  { %s94_s23 = sshll.u32 %s1449_s22, 4  ;;  %s37_s4 = sshll.u32 %s1450_s24, 4  ;;  %s95_s23 = int_to_ptr.vmem [resolvable:$true] %s94_s23  ;;  %s38_s4 = int_to_ptr.vmem [resolvable:$true] %s37_s4 }
  0x1f   :  { %s1311_s25 = scalar_lea.vmem %s95_s23, 1024  ;;  %p1316_p11 = scmp.lt.s32.totalorder %s95_s23, %s95_s23 }
  0x20   :  { %p1312_p10 = scmp.ne.s32.totalorder %s95_s23, %s1311_s25  ;;  %p1317_p12 = scmp.lt.s32.totalorder %s1311_s25, %s1311_s25 }
  0x22   :  { %p1318_p13 = por %p1317_p12, %p1316_p11 }
  0x24   :  { %p1319_p0 = pnand %p1318_p13, %p1312_p10 }
  0x26   :  { %1322 = shalt.err (!%p1319_p0)
}
  0x27   :  { %100 = dma.hbm_to_vmem [thread:$0]  %s1665_s10, 1024, %s95_s23, [#allocation13], %s1447_s18, %s1447_s18, %s1448_s19  }
  0x28   :  { %s1331_s28 = scalar_lea.vmem %s38_s4, 64  ;;  %p1336_p2 = scmp.lt.s32.totalorder %s38_s4, %s38_s4 }
  0x29   :  { %p1332_p1 = scmp.ne.s32.totalorder %s38_s4, %s1331_s28  ;;  %p1337_p3 = scmp.lt.s32.totalorder %s1331_s28, %s1331_s28 }
  0x2b   :  { %p1338_p4 = por %p1337_p3, %p1336_p2 }
  0x2d   :  { %p1339_p5 = pnand %p1338_p4, %p1332_p1 }
  0x2f   :  { %1342 = shalt.err (!%p1339_p5)
}
  0x30   :  { %40 = dma.hbm_to_vmem [thread:$0]  %s1658_s3, 64, %s38_s4, [#allocation3]  }
  0x31   :  { %s1451_s30 = smov [#allocation8]   ;;  %s1452_s15 = smov [#allocation11]  }
  0x32   :  { %s59_s14 = sshll.u32 %s1451_s30, 4  ;;  %s85_s16 = sshll.u32 %s1452_s15, 4  ;;  %s60_s14 = int_to_ptr.vmem [resolvable:$true] %s59_s14  ;;  %s86_s16 = int_to_ptr.vmem [resolvable:$true] %s85_s16 }
  0x33   :  { %s1351_s17 = scalar_lea.vmem %s60_s14, 64  ;;  %p1356_p7 = scmp.lt.s32.totalorder %s60_s14, %s60_s14 }
  0x34   :  { %p1352_p6 = scmp.ne.s32.totalorder %s60_s14, %s1351_s17  ;;  %p1357_p8 = scmp.lt.s32.totalorder %s1351_s17, %s1351_s17 }
  0x36   :  { %p1358_p9 = por %p1357_p8, %p1356_p7 }
  0x38   :  { %p1359_p10 = pnand %p1358_p9, %p1352_p6 }
  0x3a   :  { %1362 = shalt.err (!%p1359_p10)
}
  0x3b   :  { %62 = dma.hbm_to_vmem [thread:$0]  %s1660_s5, 64, %s60_s14, [#allocation7]  }
  0x3c   :  { %s1371_s19 = scalar_lea.vmem %s86_s16, 16  ;;  %s1375_s3 = scalar_lea.vmem %s86_s16, 32 }
  0x3d   :  { %p1372_p11 = scmp.ne.s32.totalorder %s86_s16, %s1371_s19  ;;  %p1376_p12 = scmp.lt.s32.totalorder %s86_s16, %s86_s16 }
  0x3e   :  { %p1377_p13 = scmp.lt.s32.totalorder %s1375_s3, %s1371_s19 }
  0x40   :  { %p1378_p0 = por %p1377_p13, %p1376_p12 }
  0x42   :  { %p1379_p1 = pnand %p1378_p0, %p1372_p11 }
  0x44   :  { %1382 = shalt.err (!%p1379_p1)
}
  0x45   :  { %88 = dma.hbm_to_vmem [thread:$0]  %s1664_s9, 16, %s86_s16, [#allocation10]  }
  0x46   :  { %s1453_s22 = smov [#allocation14]  }
  0x47   :  { %s107_s23 = sshll.u32 %s1453_s22, 4  ;;  %s108_s23 = int_to_ptr.vmem [resolvable:$true] %s107_s23 }
  0x48   :  { %s1391_s24 = scalar_lea.vmem %s108_s23, 16  ;;  %s1395_s4 = scalar_lea.vmem %s108_s23, 32 }
  0x49   :  { %p1392_p2 = scmp.ne.s32.totalorder %s108_s23, %s1391_s24  ;;  %p1396_p3 = scmp.lt.s32.totalorder %s108_s23, %s108_s23 }
  0x4a   :  { %p1397_p4 = scmp.lt.s32.totalorder %s1395_s4, %s1391_s24 }
  0x4c   :  { %p1398_p5 = por %p1397_p4, %p1396_p3 }
  0x4e   :  { %p1399_p6 = pnand %p1398_p5, %p1392_p2 }
  0x50   :  { %1402 = shalt.err (!%p1399_p6)
}
  0x51   :  { %110 = dma.hbm_to_vmem [thread:$0]  %s1666_s11, 16, %s108_s23, [#allocation13]  }
  0x52   :  { %1431 = dma.done.wait [#allocation3], 64  }
  0x53   :  { %1432 = vsyncadd [#allocation3], 4294967232 }
  0x54   :  { %1433 = dma.done.wait [#allocation7], 4160  }
  0x55   :  { %1434 = vsyncadd [#allocation7], 4294963136 }
  0x56   :  { %1435 = dma.done.wait [#allocation10], 1040  }
  0x57   :  { %1436 = vsyncadd [#allocation10], 4294966256 }
  0x58   :  { %1437 = dma.done.wait [#allocation13], 1040  }
  0x59   :  { %1438 = vsyncadd [#allocation13], 4294966256  ;;  %v1454_v0 = vmov 0   ;;  %v1177_v1 = vld [vmem:[#allocation6 + $0xe4] ss:$16 sps:$4 sm:$0xff]   ;;  %v133_v18 = vld [vmem:[%s1655_s0] sm:$0xff]  ;;  %v171_v57 = vlaneseq }
  0x5a   :  { %383 = vmatprep.mubr.bf16.mxu0 %v1454_v0  ;;  %424 = vmatprep.mubr.bf16.mxu1 %v1454_v0  ;;  %v1179_v2 = vld [vmem:[#allocation6 + $0xe0] ss:$16 sps:$4 sm:$0xff]   ;;  %v1180_v3 = vld [vmem:[#allocation6 + $0xc4] ss:$16 sps:$4 sm:$0xff]   ;;  %v1209_v14 = vld [vmem:[#allocation6 + $0xec] ss:$16 sps:$4 sm:$0xff]  }
  0x5b   :  { %351 = vmatprep.subr.bf16.mxu0 %v1177_v1  ;;  %v1182_v4 = vld [vmem:[#allocation6 + $0xc0] ss:$16 sps:$4 sm:$0xff]   ;;  %v1183_v5 = vld [vmem:[#allocation6 + $0xa4] ss:$16 sps:$4 sm:$0xff]   ;;  %v1211_v15 = vld [vmem:[#allocation6 + $0xe8] ss:$16 sps:$4 sm:$0xff]   ;;  %392 = vmatprep.subr.bf16.mxu1 %v1209_v14 }
  0x5c   :  { %352 = vmatpush1.bf16.msra.mxu0 %v1179_v2  ;;  %v1185_v6 = vld [vmem:[#allocation6 + $0xa0] ss:$16 sps:$4 sm:$0xff]   ;;  %v1186_v7 = vld [vmem:[#allocation6 + $0x84] ss:$16 sps:$4 sm:$0xff]   ;;  %v1212_v17 = vld [vmem:[#allocation6 + $0xcc] ss:$16 sps:$4 sm:$0xff]   ;;  %393 = vmatpush1.bf16.msra.mxu1 %v1211_v15 }
  0x5d   :  { %353 = vmatprep.subr.bf16.mxu0 %v1180_v3  ;;  %v1188_v8 = vld [vmem:[#allocation6 + $0x80] ss:$16 sps:$4 sm:$0xff]   ;;  %v1189_v9 = vld [vmem:[#allocation6 + $0x64] ss:$16 sps:$4 sm:$0xff]   ;;  %v1214_v20 = vld [vmem:[#allocation6 + $0xc8] ss:$16 sps:$4 sm:$0xff]   ;;  %394 = vmatprep.subr.bf16.mxu1 %v1212_v17 }
  0x5e   :  { %v1191_v10 = vld [vmem:[#allocation6 + $0x60] ss:$16 sps:$4 sm:$0xff]   ;;  %v1192_v11 = vld [vmem:[#allocation6 + $0x44] ss:$16 sps:$4 sm:$0xff]   ;;  %v1215_v22 = vld [vmem:[#allocation6 + $0xac] ss:$16 sps:$4 sm:$0xff]  }
  0x5f   :  { %v1194_v12 = vld [vmem:[#allocation6 + $0x40] ss:$16 sps:$4 sm:$0xff]   ;;  %v1195_v13 = vld [vmem:[#allocation6 + $0x24] ss:$16 sps:$4 sm:$0xff]   ;;  %v1217_v25 = vld [vmem:[#allocation6 + $0xa8] ss:$16 sps:$4 sm:$0xff]  }
  0x60   :  { %354 = vmatpush1.bf16.msra.mxu0 %v1182_v4  ;;  %v1197_v16 = vld [vmem:[#allocation6 + $0x20] ss:$16 sps:$4 sm:$0xff]   ;;  %v1198_v21 = vld [vmem:[#allocation6 + $0x4] ss:$16 sps:$4 sm:$0xff]   ;;  %395 = vmatpush1.bf16.msra.mxu1 %v1214_v20  ;;  %v1218_v26 = vld [vmem:[#allocation6 + $0x8c] ss:$16 sps:$4 sm:$0xff]  }
  0x61   :  { %355 = vmatprep.subr.bf16.mxu0 %v1183_v5  ;;  %v134_v19 = vld [vmem:[%s1656_s1] sm:$0xff]  ;;  %396 = vmatprep.subr.bf16.mxu1 %v1215_v22  ;;  %v1201_v28 = vld [vmem:[%s1661_s6 + $0x38] sm:$0xff]   ;;  %v1455_v31 = vmov 0.0   ;;  %v1202_v32 = vld [vmem:[%s1661_s6 + $0x30] sm:$0xff]   ;;  %vm1456_vm0 = vmmov 0   ;;  %v1606_v58 = vshrl.u32 %v171_v57, 7 }
  0x62   :  { %v135_v23 = vmul.f32 %v134_v19, %v133_v18  ;;  %v1200_v24 = vld [vmem:[#allocation6] ss:$16 sps:$4 sm:$0xff]   ;;  %v1220_v29 = vld [vmem:[#allocation6 + $0x88] ss:$16 sps:$4 sm:$0xff]   ;;  %v1221_v30 = vld [vmem:[#allocation6 + $0x6c] ss:$16 sps:$4 sm:$0xff]  }
  0x63   :  { %v1223_v33 = vld [vmem:[#allocation6 + $0x68] ss:$16 sps:$4 sm:$0xff]   ;;  %v1224_v34 = vld [vmem:[#allocation6 + $0x4c] ss:$16 sps:$4 sm:$0xff]   ;;  %v173_v59 = vsub.s32 0, %v1606_v58  ;;  %v177_v61 = vsub.s32 1, %v1606_v58 }
  0x64   :  { %356 = vmatpush1.bf16.msra.mxu0 %v1185_v6  ;;  %v136_v27 = vpack.c.bf16 %v135_v23, %v135_v23  ;;  %397 = vmatpush1.bf16.msra.mxu1 %v1217_v25  ;;  %v1203_v35 = vld [vmem:[%s1661_s6 + $0x28] sm:$0xff]   ;;  %v1227_v37 = vld [vmem:[#allocation6 + $0x2c] ss:$16 sps:$4 sm:$0xff]   ;;  %v1205_v41 = vld [vmem:[%s1661_s6 + $0x18] sm:$0xff]   ;;  %v181_v20 = vsub.s32 2, %v1606_v58  ;;  %vm487_vm1 = vcmask 1040384  }
  0x65   :  { %357 = vmatprep.subr.bf16.mxu0 %v1186_v7  ;;  %398 = vmatprep.subr.bf16.mxu1 %v1218_v26  ;;  %v1226_v36 = vld [vmem:[#allocation6 + $0x48] ss:$16 sps:$4 sm:$0xff]   ;;  %v1204_v38 = vld [vmem:[%s1661_s6 + $0x20] sm:$0xff]   ;;  %v1206_v43 = vld [vmem:[%s1661_s6 + $0x10] sm:$0xff]   ;;  %s1457_s8 = smov [#allocation16]   ;;  %s1458_s14 = smov [#allocation15]  }
  0x66   :  { %v1229_v39 = vld [vmem:[#allocation6 + $0x28] ss:$16 sps:$4 sm:$0xff]   ;;  %v1230_v40 = vld [vmem:[#allocation6 + $0xc] ss:$16 sps:$4 sm:$0xff]   ;;  %v1609_v60 = vld [vmem:[#allocation8] sm:$0xf] }
  0x67   :  { %v1232_v42 = vld [vmem:[#allocation6 + $0x8] ss:$16 sps:$4 sm:$0xff]   ;;  %v571_v45 = vld [vmem:[%s1657_s2] sm:$0xff]  ;;  %v1235_v51 = vld [vmem:[#allocation9 + $0x28] sm:$0xff]   ;;  %v174_v63 = vrot.slane %v1609_v60, %v173_v59  ;;  %v178_v1 = vrot.slane %v1609_v60, %v177_v61  ;;  %v182_v25 = vrot.slane %v1609_v60, %v181_v20  ;;  %s974_s15 = sshll.u32 %s1458_s14, 4  ;;  %s975_s15 = int_to_ptr.vmem [resolvable:$true] %s974_s15 }
  0x68   :  { %358 = vmatpush1.bf16.msra.mxu0 %v1188_v8  ;;  %399 = vmatpush1.bf16.msra.mxu1 %v1220_v29  ;;  %v1207_v44 = vld [vmem:[%s1661_s6 + $0x8] sm:$0xff]   ;;  %v572_v46 = vadd.f32 %v571_v45, %v135_v23  ;;  %v1208_v47 = vld [vmem:[%s1661_s6] sm:$0xff]   ;;  %v1234_v50 = vld [vmem:[#allocation9 + $0x30] sm:$0xff]   ;;  %s1411_s16 = scalar_lea.vmem %s975_s15, 128  ;;  %p1416_p8 = scmp.lt.s32.totalorder %s975_s15, %s975_s15 }
  0x69   :  { %359 = vmatprep.subr.bf16.mxu0 %v1189_v9  ;;  %400 = vmatprep.subr.bf16.mxu1 %v1221_v30  ;;  %v1233_v49 = vld [vmem:[#allocation9 + $0x38] sm:$0xff]   ;;  %v1236_v52 = vld [vmem:[#allocation9 + $0x20] sm:$0xff]   ;;  %v1238_v54 = vld [vmem:[#allocation9 + $0x10] sm:$0xff]   ;;  %p1412_p7 = scmp.ne.s32.totalorder %s975_s15, %s1411_s16  ;;  %p1417_p9 = scmp.lt.s32.totalorder %s1411_s16, %s1411_s16 }
  0x6a   :  { %v573_v48 = vpack.c.bf16 %v572_v46, %v572_v46  ;;  %v1237_v53 = vld [vmem:[#allocation9 + $0x18] sm:$0xff]   ;;  %v1239_v55 = vld [vmem:[#allocation9 + $0x8] sm:$0xff]   ;;  %v1240_v56 = vld [vmem:[#allocation9] sm:$0xff]  }
  0x6b   :  { %v1612_v62 = vld [vmem:[#allocation2] sm:$0xf]  ;;  %p1418_p10 = por %p1417_p9, %p1416_p8 }
  0x6c   :  { %360 = vmatpush1.bf16.msra.mxu0 %v1191_v10  ;;  %401 = vmatpush1.bf16.msra.mxu1 %v1223_v33  ;;  %v438_v0 = vrot.slane %v1612_v62, %v173_v59  ;;  %v442_v4 = vrot.slane %v1612_v62, %v177_v61 }
  0x6d   :  { %361 = vmatprep.subr.bf16.mxu0 %v1192_v11  ;;  %402 = vmatprep.subr.bf16.mxu1 %v1224_v34  ;;  %p1419_p11 = pnand %p1418_p10, %p1412_p7 }
  0x70   :  { %362 = vmatpush1.bf16.msra.mxu0 %v1194_v12  ;;  %403 = vmatpush1.bf16.msra.mxu1 %v1226_v36  ;;  %v1031_v36 = vld [vmem:[%s1662_s7] ss:$0 sm:$0xff] }
  0x71   :  { %363 = vmatprep.subr.bf16.mxu0 %v1195_v13  ;;  %404 = vmatprep.subr.bf16.mxu1 %v1227_v37 }
  0x74   :  { %364 = vmatpush1.bf16.msra.mxu0 %v1197_v16  ;;  %405 = vmatpush1.bf16.msra.mxu1 %v1229_v39 }
  0x75   :  { %365 = vmatprep.subr.bf16.mxu0 %v1198_v21  ;;  %406 = vmatprep.subr.bf16.mxu1 %v1230_v40 }
  0x78   :  { %366 = vmatpush1.bf16.msra.mxu0 %v1200_v24  ;;  %407 = vmatpush1.bf16.msra.mxu1 %v1232_v42 }
  0x79   :  { %1085 = vmatprep.subr.bf16.mxu0 %v1455_v31  ;;  %1105 = vmatprep.subr.bf16.mxu1 %v1455_v31 }
  0x7b   :  { %384 = vmatmul.mubr.bf16.vlgmr.msra.gmra.mxu0 %v136_v27  ;;  %425 = vmatmul.mubr.bf16.vlgmr.msra.gmra.mxu1 %v136_v27 }
  0x7c   :  { %1086 = vmatpush3.bf16.msra.mxu0 %v1201_v28  ;;  %1101 = vmatprep.mubr.msk.bf16.mxu0 %vm1456_vm0, %v1455_v31  ;;  %v446_v28 = vrot.slane %v1612_v62, %v181_v20 }
  0x7d   :  { %1087 = vmatprep.subr.bf16.mxu0 %v1455_v31  ;;  %1121 = vmatprep.mubr.msk.bf16.mxu1 %vm1456_vm0, %v1455_v31 }
  0x7e   :  { %1106 = vmatpush3.bf16.msra.mxu1 %v1233_v49 }
  0x7f   :  { %1107 = vmatprep.subr.bf16.mxu1 %v1455_v31 }
  0x80   :  { %1088 = vmatpush3.bf16.msra.mxu0 %v1202_v32 }
  0x81   :  { %1089 = vmatprep.subr.bf16.mxu0 %v1455_v31 }
  0x82   :  { %1108 = vmatpush3.bf16.msra.mxu1 %v1234_v50 }
  0x83   :  { %1109 = vmatprep.subr.bf16.mxu1 %v1455_v31 }
  0x84   :  { %1090 = vmatpush3.bf16.msra.mxu0 %v1203_v35 }
  0x85   :  { %1091 = vmatprep.subr.bf16.mxu0 %v1455_v31 }
  0x86   :  { %1110 = vmatpush3.bf16.msra.mxu1 %v1235_v51 }
  0x87   :  { %1111 = vmatprep.subr.bf16.mxu1 %v1455_v31 }
  0x88   :  { %1092 = vmatpush3.bf16.msra.mxu0 %v1204_v38 }
  0x89   :  { %1093 = vmatprep.subr.bf16.mxu0 %v1455_v31 }
  0x8a   :  { %1112 = vmatpush3.bf16.msra.mxu1 %v1236_v52 }
  0x8b   :  { %1113 = vmatprep.subr.bf16.mxu1 %v1455_v31 }
  0x8c   :  { %1094 = vmatpush3.bf16.msra.mxu0 %v1205_v41 }
  0x8d   :  { %1095 = vmatprep.subr.bf16.mxu0 %v1455_v31 }
  0x8e   :  { %1114 = vmatpush3.bf16.msra.mxu1 %v1237_v53  ;;  %v185_v53 = vsub.s32 3, %v1606_v58 }
  0x8f   :  { %1115 = vmatprep.subr.bf16.mxu1 %v1455_v31 }
  0x90   :  { %1096 = vmatpush3.bf16.msra.mxu0 %v1206_v43  ;;  %v450_v57 = vrot.slane %v1612_v62, %v185_v53 }
  0x91   :  { %1097 = vmatprep.subr.bf16.mxu0 %v1455_v31 }
  0x92   :  { %1116 = vmatpush3.bf16.msra.mxu1 %v1238_v54 }
  0x93   :  { %1117 = vmatprep.subr.bf16.mxu1 %v1455_v31 }
  0x94   :  { %1098 = vmatpush3.bf16.msra.mxu0 %v1207_v44 }
  0x95   :  { %1099 = vmatprep.subr.bf16.mxu0 %v1455_v31 }
  0x96   :  { %1118 = vmatpush3.bf16.msra.mxu1 %v1239_v55 }
  0x97   :  { %1119 = vmatprep.subr.bf16.mxu1 %v1455_v31 }
  0x98   :  { %1100 = vmatpush3.bf16.msra.mxu0 %v1208_v47 }
  0x99   :  { %1125 = vmatprep.subr.bf16.mxu0 %v1455_v31 }
  0x9a   :  { %1120 = vmatpush3.bf16.msra.mxu1 %v1240_v56  ;;  %v186_v56 = vrot.slane %v1609_v60, %v185_v53 }
  0x9b   :  { %1102 = vmatmul.mubr.bf16.vlgmr.msra.gmra.mxu0 %v573_v48 }
  0x9c   :  { %1141 = vmatprep.mubr.msk.bf16.mxu0 %vm1456_vm0, %v1455_v31 }
 0x13b   :  { %v385_v2 = vpop.f32.mrf.mxu0  ;;  %v426_v29 = vpop.f32.mrf.mxu1 }
 0x13c   :  { %v386_v3 = vadd.f32 %v385_v2, %v174_v63  ;;  %v1622_v30 = vadd.f32 %v426_v29, %v182_v25 }
 0x13d   :  { %v387_v5 = vpop.f32.mrf.mxu0  ;;  %v428_v54 = vpop.f32.mrf.mxu1 }
 0x13e   :  { %v455_v6 = vsub.f32 %v386_v3, %v438_v0  ;;  %v388_v7 = vadd.f32 %v387_v5, %v178_v1  ;;  %v457_v33 = vsub.f32 %v1622_v30, %v446_v28  ;;  %v1633_v63 = vadd.f32 %v428_v54, %v186_v56 }
 0x13f   :  { %v389_v8 = vpop.f32.mrf.mxu0  ;;  %v430_v59 = vpop.f32.mrf.mxu1 }
 0x140   :  { %v459_v9 = vmul.f32 %v455_v6, %v455_v6  ;;  %v456_v10 = vsub.f32 %v388_v7, %v442_v4  ;;  %v461_v34 = vmul.f32 %v457_v33, %v457_v33  ;;  %v458_v2 = vsub.f32 %v1633_v63, %v450_v57  ;;  %v1040_v59 = vld [vmem:[#allocation11] ss:$0 sm:$0xff] }
 0x141   :  { %v390_v11 = vpop.f32.mrf.mxu0  ;;  %v431_v0 = vpop.f32.mrf.mxu1 }
 0x142   :  { %v463_v12 = vrot.slane %v459_v9, 4  ;;  %v460_v13 = vmul.f32 %v456_v10, %v456_v10  ;;  %v475_v35 = vrot.slane %v461_v34, 4  ;;  %v462_v4 = vmul.f32 %v458_v2, %v458_v2 }
 0x144   :  { %v464_v14 = vadd.f32 %v463_v12, %v459_v9  ;;  %v469_v15 = vrot.slane %v460_v13, 4  ;;  %v476_v37 = vadd.f32 %v475_v35, %v461_v34  ;;  %v481_v6 = vrot.slane %v462_v4, 4  ;;  %v1241_v35 = vld [vmem:[#allocation12 + $0x38] sm:$0xff]  }
 0x145   :  { %1126 = vmatpush3.bf16.msra.mxu0 %v1241_v35 }
 0x146   :  { %v470_v16 = vadd.f32 %v469_v15, %v460_v13  ;;  %v465_v17 = vrot.slane %v464_v14, 2  ;;  %v477_v39 = vrot.slane %v476_v37, 2  ;;  %v482_v58 = vadd.f32 %v481_v6, %v462_v4  ;;  %1127 = vmatprep.subr.bf16.mxu0 %v1455_v31 }
 0x148   :  { %v466_v18 = vadd.f32 %v465_v17, %v464_v14  ;;  %v471_v19 = vrot.slane %v470_v16, 2  ;;  %v478_v42 = vadd.f32 %v477_v39, %v476_v37  ;;  %v483_v9 = vrot.slane %v482_v58, 2  ;;  %v1243_v37 = vld [vmem:[#allocation12 + $0x28] sm:$0xff]   ;;  %v1245_v39 = vld [vmem:[#allocation12 + $0x18] sm:$0xff]  }
 0x14a   :  { %v467_v21 = vrot.slane %v466_v18, 1  ;;  %v472_v22 = vadd.f32 %v471_v19, %v470_v16  ;;  %v479_v45 = vrot.slane %v478_v42, 1  ;;  %v484_v60 = vadd.f32 %v483_v9, %v482_v58 }
 0x14c   :  { %v468_v23 = vadd.f32 %v467_v21, %v466_v18  ;;  %v473_v24 = vrot.slane %v472_v22, 1  ;;  %v480_v49 = vadd.f32 %v479_v45, %v478_v42  ;;  %v485_v62 = vrot.slane %v484_v60, 1  ;;  %v1247_v42 = vld [vmem:[#allocation12 + $0x8] sm:$0xff]   ;;  %v1248_v45 = vld [vmem:[#allocation12] sm:$0xff]  }
 0x14e   :  { %v488_v26 = vsel %vm487_vm1, %v468_v23, 0.0  ;;  %v474_v27 = vadd.f32 %v473_v24, %v472_v22  ;;  %v528_v51 = vsel %vm487_vm1, %v480_v49, 0.0  ;;  %v486_v13 = vadd.f32 %v485_v62, %v484_v60 }
 0x14f   :  { %489 = vadd.xlane.f32.xlu0 %v488_v26  ;;  %529 = vadd.xlane.f32.xlu1 %v528_v51 }
 0x150   :  { %v508_v32 = vsel %vm487_vm1, %v474_v27, 0.0  ;;  %v548_v15 = vsel %vm487_vm1, %v486_v13, 0.0 }
 0x153   :  { %509 = vadd.xlane.f32.xlu0 %v508_v32  ;;  %549 = vadd.xlane.f32.xlu1 %v548_v15 }
 0x15b   :  { %v679_v38 = vpop.f32.mrf.mxu0 }
 0x15c   :  { %v680_v40 = vadd.f32 %v1031_v36, %v679_v38  ;;  %v1242_v36 = vld [vmem:[#allocation12 + $0x30] sm:$0xff]   ;;  %v1244_v38 = vld [vmem:[#allocation12 + $0x20] sm:$0xff]  }
 0x15d   :  { %v1103_v41 = vpop.f32.mrf.mxu0  ;;  %1128 = vmatpush3.bf16.msra.mxu0 %v1242_v36 }
 0x15e   :  { %vm685_vm2 = vcmp.gt.f32.partialorder %v680_v40, 0.0  ;;  %v686_v43 = vmul.f32 0.2, %v680_v40  ;;  %1129 = vmatprep.subr.bf16.mxu0 %v1455_v31 }
 0x15f   :  { %v682_v44 = vpop.f32.mrf.mxu0 }
 0x160   :  { %v687_v46 = vsel %vm685_vm2, %v680_v40, %v686_v43  ;;  %v1246_v40 = vld [vmem:[#allocation12 + $0x10] sm:$0xff]  }
 0x161   :  { %v688_v47 = vmul.f32 %v687_v46, %v386_v3  ;;  %v1104_v48 = vpop.f32.mrf.mxu0  ;;  %1130 = vmatpush3.bf16.msra.mxu0 %v1243_v37 }
 0x162   :  { %1131 = vmatprep.subr.bf16.mxu0 %v1455_v31 }
 0x163   :  { %v689_v50 = vadd.f32 %v688_v47, %v388_v7 }
 0x165   :  { %v690_v52 = vrot.slane %v689_v50, 4  ;;  %1132 = vmatpush3.bf16.msra.mxu0 %v1244_v38 }
 0x166   :  { %1133 = vmatprep.subr.bf16.mxu0 %v1455_v31 }
 0x167   :  { %v691_v55 = vadd.f32 %v690_v52, %v689_v50 }
 0x169   :  { %v692_v61 = vrot.slane %v691_v55, 2  ;;  %1134 = vmatpush3.bf16.msra.mxu0 %v1245_v39 }
 0x16a   :  { %1135 = vmatprep.subr.bf16.mxu0 %v1455_v31 }
 0x16b   :  { %v693_v1 = vadd.f32 %v692_v61, %v691_v55 }
 0x16d   :  { %v694_v3 = vrot.slane %v693_v1, 1  ;;  %1136 = vmatpush3.bf16.msra.mxu0 %v1246_v40 }
 0x16e   :  { %1137 = vmatprep.subr.bf16.mxu0 %v1455_v31 }
 0x16f   :  { %v695_v5 = vadd.f32 %v694_v3, %v693_v1 }
 0x171   :  { %v697_v7 = vmul.f32 0.125, %v695_v5  ;;  %1138 = vmatpush3.bf16.msra.mxu0 %v1247_v42 }
 0x172   :  { %1139 = vmatprep.subr.bf16.mxu0 %v1455_v31 }
 0x173   :  { %v698_v8 = vsub.f32 %v689_v50, %v697_v7 }
 0x175   :  { %v699_v10 = vmul.f32 %v698_v8, %v698_v8  ;;  %1140 = vmatpush3.bf16.msra.mxu0 %v1248_v45 }
 0x177   :  { %v700_v11 = vrot.slane %v699_v10, 4 }
 0x179   :  { %v701_v12 = vadd.f32 %v700_v11, %v699_v10 }
 0x17b   :  { %v702_v14 = vrot.slane %v701_v12, 2 }
 0x17d   :  { %v703_v16 = vadd.f32 %v702_v14, %v701_v12 }
 0x17f   :  { %v704_v17 = vrot.slane %v703_v16, 1 }
 0x181   :  { %v705_v18 = vadd.f32 %v704_v17, %v703_v16 }
 0x183   :  { %v706_v19 = vmul.f32 0.125, %v705_v18 }
 0x185   :  { %v707_v20 = vadd.f32 0.8, %v706_v19 }
 0x187   :  { %1249 = vrsqrt.f32 %v707_v20 }
 0x194   :  { %v1250_v21 = vpop.eup %1249 }
 0x195   :  { %v709_v22 = vmul.f32 %v1250_v21, %v698_v8 }
 0x197   :  { %vm710_vm3 = vcmp.gt.f32.partialorder %v709_v22, 0.0  ;;  %v711_v23 = vmul.f32 0.2, %v709_v22 }
 0x199   :  { %v712_v24 = vsel %vm710_vm3, %v709_v22, %v711_v23 }
 0x19a   :  { %v713_v25 = vpack.c.bf16 %v712_v24, %v712_v24 }
 0x19c   :  { %1122 = vmatmul.mubr.bf16.vlgmr.msra.gmra.mxu1 %v713_v25 }
 0x1d8   :  { %v490_v26 = vpop.xlane.xlu0 %489  ;;  %v530_v56 = vpop.xlane.xlu1 %529 }
 0x1d9   :  { %v491_v27 = vrot.slane %v490_v26, 4  ;;  %v531_v57 = vrot.slane %v530_v56, 4 }
 0x1db   :  { %v492_v28 = vadd.f32 %v491_v27, %v490_v26  ;;  %v532_v1 = vadd.f32 %v531_v57, %v530_v56  ;;  %v1049_v56 = vld [vmem:[#allocation14] ss:$0 sm:$0xff] }
 0x1dc   :  { %v510_v41 = vpop.xlane.xlu0 %509  ;;  %v550_v37 = vpop.xlane.xlu1 %549 }
 0x1dd   :  { %v493_v29 = vrot.slane %v492_v28, 2  ;;  %v511_v43 = vrot.slane %v510_v41, 4  ;;  %v533_v6 = vrot.slane %v532_v1, 2  ;;  %v551_v38 = vrot.slane %v550_v37, 4 }
 0x1df   :  { %v494_v32 = vadd.f32 %v493_v29, %v492_v28  ;;  %v512_v46 = vadd.f32 %v511_v43, %v510_v41  ;;  %v534_v9 = vadd.f32 %v533_v6, %v532_v1  ;;  %v552_v40 = vadd.f32 %v551_v38, %v550_v37 }
 0x1e1   :  { %v495_v33 = vrot.slane %v494_v32, 1  ;;  %v513_v47 = vrot.slane %v512_v46, 2  ;;  %v535_v11 = vrot.slane %v534_v9, 1  ;;  %v553_v41 = vrot.slane %v552_v40, 2 }
 0x1e3   :  { %v496_v34 = vadd.f32 %v495_v33, %v494_v32  ;;  %v514_v48 = vadd.f32 %v513_v47, %v512_v46  ;;  %v536_v16 = vadd.f32 %v535_v11, %v534_v9  ;;  %v554_v42 = vadd.f32 %v553_v41, %v552_v40 }
 0x1e5   :  { %1145 = vpush %v496_v34  ;;  %v515_v50 = vrot.slane %v514_v48, 1  ;;  %v555_v45 = vrot.slane %v554_v42, 1 }
 0x1e7   :  { %v516_v55 = vadd.f32 %v515_v50, %v514_v48 }
 0x216   :  { %s1146_s7 = spop %1145 }
 0x217   :  { %v498_v44 = vstv %s1146_s7 }
 0x218   :  { %1251 = vrsqrt.f32 %v498_v44  ;;  %vm501_vm4 = vcmp.eq.f32.partialorder %v498_v44, inf  ;;  %v504_v52 = vand.u32 2147483648, %v498_v44  ;;  %vm503_vm5 = vcmp.eq.f32.partialorder %v498_v44, 0.0 }
 0x225   :  { %v1252_v49 = vpop.eup %1251 }
 0x226   :  { %v500_v51 = vmul.f32 %v1252_v49, %v498_v44  ;;  %v556_v49 = vadd.f32 %v555_v45, %v554_v42 }
 0x228   :  { %v502_v53 = vsel %vm501_vm4, %v498_v44, %v500_v51 }
 0x229   :  { %v505_v54 = vsel %vm503_vm5, %v504_v52, %v502_v53 }
 0x22a   :  { %1147 = vpush %v505_v54 }
 0x22b   :  { %1149 = vpush %v516_v55 }
 0x25b   :  { %s1644_s24 = spop %1147 }
 0x25c   :  { %s1150_s4 = spop %1149  ;;  %v819_v31 = vpop.f32.mrf.mxu1 }
 0x25d   :  { %v518_v61 = vstv %s1150_s4  ;;  %v820_v0 = vadd.f32 %v1040_v59, %v819_v31 }
 0x25e   :  { %1253 = vrsqrt.f32 %v518_v61  ;;  %v1123_v2 = vpop.f32.mrf.mxu1  ;;  %vm521_vm7 = vcmp.eq.f32.partialorder %v518_v61, inf  ;;  %v524_v15 = vand.u32 2147483648, %v518_v61  ;;  %vm523_vm8 = vcmp.eq.f32.partialorder %v518_v61, 0.0 }
 0x25f   :  { %vm825_vm6 = vcmp.gt.f32.partialorder %v820_v0, 0.0  ;;  %v826_v3 = vmul.f32 0.2, %v820_v0 }
 0x260   :  { %v822_v4 = vpop.f32.mrf.mxu1 }
 0x261   :  { %v827_v5 = vsel %vm825_vm6, %v820_v0, %v826_v3 }
 0x262   :  { %v828_v7 = vmul.f32 %v827_v5, %v1622_v30  ;;  %v1124_v58 = vpop.f32.mrf.mxu1 }
 0x264   :  { %v829_v8 = vadd.f32 %v828_v7, %v1633_v63 }
 0x266   :  { %v830_v10 = vrot.slane %v829_v8, 4 }
 0x268   :  { %v831_v60 = vadd.f32 %v830_v10, %v829_v8 }
 0x26a   :  { %v832_v62 = vrot.slane %v831_v60, 2 }
 0x26b   :  { %v1254_v12 = vpop.eup %1253 }
 0x26c   :  { %v833_v13 = vadd.f32 %v832_v62, %v831_v60  ;;  %v520_v14 = vmul.f32 %v1254_v12, %v518_v61 }
 0x26e   :  { %v834_v17 = vrot.slane %v833_v13, 1  ;;  %v522_v18 = vsel %vm521_vm7, %v518_v61, %v520_v14 }
 0x26f   :  { %v525_v19 = vsel %vm523_vm8, %v524_v15, %v522_v18 }
 0x270   :  { %v835_v20 = vadd.f32 %v834_v17, %v833_v13  ;;  %1151 = vpush %v525_v19 }
 0x271   :  { %1153 = vpush %v536_v16 }
 0x272   :  { %v836_v30 = vmul.f32 0.125, %v835_v20 }
 0x274   :  { %v837_v63 = vsub.f32 %v829_v8, %v836_v30 }
 0x276   :  { %v838_v21 = vmul.f32 %v837_v63, %v837_v63 }
 0x278   :  { %v839_v22 = vrot.slane %v838_v21, 4 }
 0x27a   :  { %v840_v23 = vadd.f32 %v839_v22, %v838_v21 }
 0x27c   :  { %v841_v24 = vrot.slane %v840_v23, 2 }
 0x27e   :  { %v842_v25 = vadd.f32 %v841_v24, %v840_v23 }
 0x280   :  { %v843_v26 = vrot.slane %v842_v25, 1 }
 0x282   :  { %v844_v27 = vadd.f32 %v843_v26, %v842_v25 }
 0x284   :  { %v845_v28 = vmul.f32 0.125, %v844_v27 }
 0x286   :  { %v846_v29 = vadd.f32 0.8, %v845_v28 }
 0x288   :  { %1255 = vrsqrt.f32 %v846_v29 }
 0x295   :  { %v1256_v32 = vpop.eup %1255 }
 0x296   :  { %v848_v33 = vmul.f32 %v1256_v32, %v837_v63 }
 0x298   :  { %vm849_vm9 = vcmp.gt.f32.partialorder %v848_v33, 0.0  ;;  %v850_v34 = vmul.f32 0.2, %v848_v33 }
 0x29a   :  { %v851_v35 = vsel %vm849_vm9, %v848_v33, %v850_v34 }
 0x29b   :  { %v852_v36 = vpack.c.bf16 %v851_v35, %v851_v35 }
 0x29d   :  { %1142 = vmatmul.mubr.bf16.vlgmr.msra.gmra.mxu0 %v852_v36 }
 0x2a1   :  { %s1152_s5 = spop %1151 }
 0x2a2   :  { %s1154_s25 = spop %1153  ;;  %s527_s9 = sadd.f32 %s1152_s5, %s1644_s24 }
 0x2a3   :  { %v538_v39 = vstv %s1154_s25 }
 0x2a4   :  { %1257 = vrsqrt.f32 %v538_v39  ;;  %vm541_vm10 = vcmp.eq.f32.partialorder %v538_v39, inf  ;;  %v544_v44 = vand.u32 2147483648, %v538_v39  ;;  %vm543_vm11 = vcmp.eq.f32.partialorder %v538_v39, 0.0 }
 0x2b1   :  { %v1258_v43 = vpop.eup %1257 }
 0x2b2   :  { %v540_v46 = vmul.f32 %v1258_v43, %v538_v39 }
 0x2b4   :  { %v542_v47 = vsel %vm541_vm10, %v538_v39, %v540_v46 }
 0x2b5   :  { %v545_v48 = vsel %vm543_vm11, %v544_v44, %v542_v47 }
 0x2b6   :  { %1155 = vpush %v545_v48 }
 0x2b7   :  { %1157 = vpush %v556_v49 }
 0x2e7   :  { %s1156_s11 = spop %1155 }
 0x2e8   :  { %s547_s26 = sadd.f32 %s1156_s11, %s527_s9  ;;  %s1158_s27 = spop %1157 }
 0x2e9   :  { %v558_v50 = vstv %s1158_s27 }
 0x2ea   :  { %1259 = vrsqrt.f32 %v558_v50  ;;  %vm561_vm12 = vcmp.eq.f32.partialorder %v558_v50, inf  ;;  %v564_v53 = vand.u32 2147483648, %v558_v50  ;;  %vm563_vm13 = vcmp.eq.f32.partialorder %v558_v50, 0.0 }
 0x2f7   :  { %v1260_v51 = vpop.eup %1259 }
 0x2f8   :  { %v560_v52 = vmul.f32 %v1260_v51, %v558_v50 }
 0x2fa   :  { %v562_v54 = vsel %vm561_vm12, %v558_v50, %v560_v52 }
 0x2fb   :  { %v565_v55 = vsel %vm563_vm13, %v564_v53, %v562_v54 }
 0x2fc   :  { %1159 = vpush %v565_v55 }
 0x32d   :  { %s1160_s0 = spop %1159 }
 0x32e   :  { %s567_s28 = sadd.f32 %s1160_s0, %s547_s26 }
 0x330   :  { %s570_s1 = smul.f32 0.25, %s567_s28 }
 0x332   :  { %967 = sst [smem:[#allocation16]] %s570_s1 }
 0x333   :  { %985 = dma.smem_to_hbm %s1457_s8, 16, %s1668_s13, [#allocation5]  }
 0x35d   :  { %v958_v57 = vpop.f32.mrf.mxu0 }
 0x35e   :  { %v959_v59 = vadd.f32 %v1049_v56, %v958_v57 }
 0x35f   :  { %v1143_v31 = vpop.f32.mrf.mxu0 }
 0x360   :  { %1261 = vtanh.f32 %v959_v59 }
 0x361   :  { %v961_v61 = vpop.f32.mrf.mxu0 }
 0x363   :  { %v1144_v0 = vpop.f32.mrf.mxu0 }
 0x36d   :  { %v1262_v1 = vpop.eup %1261 }
 0x36e   :  { %965 = vst [vmem:[#allocation15] sm:$0xff] %v1262_v1 }
 0x36f   :  { %1422 = shalt.err (!%p1419_p11)
}
 0x370   :  { %977 = dma.vmem_to_hbm [thread:$0]  %s975_s15, 128, %s1667_s12, [#allocation4]  }
 0x371   :  { %1439 = dma.done.wait [#allocation4], 128  }
 0x372   :  { %1440 = vsyncadd [#allocation4], 4294967168 }
 0x373   :  { %1441 = dma.done.wait [#allocation5], 16  }
 0x374   :  { %1442 = vsyncadd [#allocation5], 4294967280 }
 0x375   :  { %992 = sfence }
 0x376   :  { %993 = vsyncpa [#allocation3], 1 }
 0x377   :  { %994 = vsyncpa [#allocation7], 1 }
 0x378   :  { %995 = vsyncpa [#allocation10], 1 }
 0x379   :  { %996 = vsyncpa [#allocation13], 1 }
 0x37a   :  { %997 = vsyncpa [#allocation4], 1 }
 0x37b   :  { %998 = vsyncpa [#allocation5], 1 }

</bundles_post_ra>
